<compile_context>
chip_gen: v6e
topology: v6e:2x2x1
jax: 0.10.0
libtpu: 0.0.40
codegen_flags: <defaults>
</compile_context>

<pallas_src>
from functools import lru_cache

import numpy as np
import jax
import jax.numpy as jnp
from jax import lax
from jax.experimental import pallas as pl
from jax.experimental.pallas import tpu as pltpu


# ----------------------------------------------------------------------------
# Pallas kernel: XGradCAM fusion + bilinear upsample + relu + min/max norm
# ----------------------------------------------------------------------------
def xgradcam_kernel(a_ref, g_ref, lhe_ref, rlw_ref, o_ref):
    A = a_ref[...]                                   # (C, UVp) activations
    G = g_ref[...]                                   # (C, UVp) gradients

    # per-channel sums (XGrad-CAM weights): single lane-axis reductions
    s_a = jnp.sum(A, axis=1, keepdims=True)          # (C, 1)
    s_ag = jnp.sum(A * G, axis=1, keepdims=True)     # (C, 1)
    nz = s_a != 0.0
    denom = jnp.where(nz, s_a, jnp.ones_like(s_a))
    # torch semantics: only divide when the channel sum is nonzero.
    # Exact divide (only C scalars) — approx reciprocal not worth the error.
    alpha = jnp.where(nz, s_ag / denom, s_ag)        # (C, 1)

    # fused saliency map (flat row): sum_c alpha_c * A_c
    C = A.shape[0]
    if C >= 128:
        # large C: offload the channel contraction to the MXU
        fused = lax.dot_general(alpha, A, (((0,), (0,)), ((), ())),
                                preferred_element_type=jnp.float32)  # (1, UVp)
    else:
        # small C: a handful of lane-dense VPU multiply-adds
        fused = jnp.sum(alpha * A, axis=0, keepdims=True)            # (1, UVp)

    # bilinear upsample without any in-kernel reshape:
    #   up[h, w] = sum_k LhE[h, k] * fused[k] * RLwT[k, w]  ==  Lh @ F @ Lw^T
    scaled = lhe_ref[...] * fused                    # (HT, UVp), row broadcast
    up = jnp.dot(scaled, rlw_ref[...],
                 preferred_element_type=jnp.float32)  # (HT, WT)

    up = jnp.maximum(up, 0.0)                        # F.relu
    mx = jnp.max(jnp.max(up, axis=1, keepdims=True), axis=0, keepdims=True)
    mn = jnp.min(jnp.min(up, axis=1, keepdims=True), axis=0, keepdims=True)
    neq = mx != mn
    rng = jnp.where(neq, mx - mn, jnp.ones_like(mx))
    o_ref[...] = jnp.where(neq, (up - mn) * pl.reciprocal(rng, approx=True), up)


def xgradcam_saliency(acts2d, grads2d, lhe, rlw):
    """acts2d/grads2d: (C, UVp) f32; lhe: (HT, UVp); rlw: (UVp, WT) -> (HT, WT)."""
    C, UVp = acts2d.shape
    HT, UVp2 = lhe.shape
    UVp3, WT = rlw.shape
    assert UVp == UVp2 == UVp3 and grads2d.shape == (C, UVp)
    # Gridless single-shot call: whole operands resident in VMEM, no pipeline
    # double-buffering, no per-step overhead.
    return pl.pallas_call(
        xgradcam_kernel,
        out_shape=jax.ShapeDtypeStruct((HT, WT), jnp.float32),
        in_specs=[pl.BlockSpec(memory_space=pltpu.MemorySpace.VMEM)] * 4,
        out_specs=pl.BlockSpec(memory_space=pltpu.MemorySpace.VMEM),
    )(acts2d, grads2d, lhe, rlw)


# ----------------------------------------------------------------------------
# Glue: 1-D bilinear interpolation operator matching
# F.interpolate(mode='bilinear', align_corners=False)
# ----------------------------------------------------------------------------
@lru_cache(maxsize=None)
def _bilinear_matrix(in_size, out_size):
    scale = in_size / out_size
    o = np.arange(out_size, dtype=np.float64)
    src = (o + 0.5) * scale - 0.5
    src = np.maximum(src, 0.0)                 # PyTorch clamps negative src idx
    i0 = np.minimum(np.floor(src).astype(np.int64), in_size - 1)
    i1 = np.minimum(i0 + 1, in_size - 1)
    w1 = src - i0
    w0 = 1.0 - w1
    L = np.zeros((out_size, in_size), dtype=np.float64)
    L[np.arange(out_size), i0] += w0
    L[np.arange(out_size), i1] += w1
    return L.astype(np.float32)


@lru_cache(maxsize=None)
def _flat_upsample_operators(u, v, ht, wt):
    """Flat-layout bilinear operators (host-side, cached, built once)."""
    lh = _bilinear_matrix(u, ht)               # (ht, u)
    lw = _bilinear_matrix(v, wt)               # (wt, v)
    uv = u * v
    uvp = ((uv + 127) // 128) * 128            # lane-dense padding
    lhe = np.zeros((ht, uvp), np.float32)
    lhe[:, :uv] = np.repeat(lh, v, axis=1)     # LhE[h, u*V+v] = lh[h, u]
    rlw = np.zeros((uvp, wt), np.float32)
    rlw[:uv, :] = np.tile(lw.T, (u, 1))        # RLwT[u*V+v, w] = lw[w, v]
    return lhe, rlw
    # TODO(synk): for target resolutions >= 224, also pad WT to a multiple of
    # 128 (and mask padded columns out of the min/max) for lane-dense stores.


# ----------------------------------------------------------------------------
# Glue: synthetic wrapped model (the hooked layer is the conv output)
# TODO(synk): the original module wraps an arbitrary external `model`; here a
# small deterministic conv + GAP + linear stands in for it, and jax.grad
# replaces the forward/backward hooks + logits[cls].backward().
# ----------------------------------------------------------------------------
def init_params(key, cin=3, c=8, num_classes=10):
    k1, k2, k3, k4 = jax.random.split(key, 4)
    conv_w = 0.1 * jax.random.normal(k1, (c, cin, 3, 3), jnp.float32)
    conv_b = 0.1 * jax.random.normal(k2, (c,), jnp.float32)
    fc_w = 0.1 * jax.random.normal(k3, (num_classes, c), jnp.float32)
    fc_b = 0.1 * jax.random.normal(k4, (num_classes,), jnp.float32)
    return conv_w, conv_b, fc_w, fc_b


def target_layer(params, x):
    conv_w, conv_b, _, _ = params
    y = lax.conv_general_dilated(
        x, conv_w, window_strides=(2, 2), padding=((1, 1), (1, 1)),
        dimension_numbers=("NCHW", "OIHW", "NCHW"))
    return y + conv_b[None, :, None, None]          # (1, C, u, v)


def head(params, acts):
    _, _, fc_w, fc_b = params
    feat = jnp.maximum(acts, 0.0)
    pooled = jnp.mean(feat, axis=(2, 3))            # (1, C)
    return pooled @ fc_w.T + fc_b                   # (1, num_classes)


def xgradcam_forward(params, x, classid=None):
    _, _, ht, wt = x.shape
    acts = target_layer(params, x)                  # hooked activations (1,C,u,v)
    logits = head(params, acts).squeeze()           # (num_classes,)
    if classid is not None:
        cls = jnp.asarray(classid, jnp.int32)
    else:
        cls = jnp.argmax(logits)
    # backward-hook equivalent: d logits[cls] / d activations
    grads = jax.grad(lambda a: head(params, a).squeeze()[cls])(acts)  # (1,C,u,v)

    _, C, u, v = acts.shape
    uv = u * v
    uvp = ((uv + 127) // 128) * 128
    a2 = acts[0].reshape(C, uv).astype(jnp.float32)     # lane-dense (C, U*V)
    g2 = grads[0].reshape(C, uv).astype(jnp.float32)
    if uvp != uv:
        pad = ((0, 0), (0, uvp - uv))
        a2 = jnp.pad(a2, pad)
        g2 = jnp.pad(g2, pad)

    lhe_np, rlw_np = _flat_upsample_operators(u, v, ht, wt)
    lhe = jnp.asarray(lhe_np)                       # (ht, uvp)
    rlw = jnp.asarray(rlw_np)                       # (uvp, wt)

    saliency = xgradcam_saliency(a2, g2, lhe, rlw)  # (ht, wt)
    return saliency, logits


# ----------------------------------------------------------------------------
# Pure-JAX reference of the same math (sanity check of the kernel lowering)
# ----------------------------------------------------------------------------
def reference_saliency(acts3d, grads3d, lh, lw):
    C, u, v = acts3d.shape
    A = acts3d.reshape(C, u * v)
    G = grads3d.reshape(C, u * v)
    s_a = jnp.sum(A, axis=1, keepdims=True)
    s_ag = jnp.sum(A * G, axis=1, keepdims=True)
    alpha = jnp.where(s_a != 0.0, s_ag / jnp.where(s_a != 0.0, s_a, 1.0), s_ag)
    fused = jnp.sum(alpha * A, axis=0).reshape(u, v)
    up = jnp.maximum(lh @ fused @ lw.T, 0.0)
    mx, mn = jnp.max(up), jnp.min(up)
    return jnp.where(mx != mn, (up - mn) / jnp.where(mx != mn, mx - mn, 1.0), up)


if __name__ == "__main__":
    key = jax.random.PRNGKey(0)
    kx, kp = jax.random.split(key)
    x = jax.random.normal(kx, (1, 3, 32, 32), jnp.float32)   # NCHW, batch=1
    params = init_params(kp, cin=3, c=8, num_classes=10)

    fwd = jax.jit(xgradcam_forward, static_argnums=(2,))
    saliency, logits = fwd(params, x, None)
    saliency = jax.block_until_ready(saliency)
    logits = jax.block_until_ready(logits)

    # sanity check kernel vs pure-JAX reference of identical math
    acts = target_layer(params, x)
    cls = jnp.argmax(logits)
    grads = jax.grad(lambda a: head(params, a).squeeze()[cls])(acts)
    u, v = acts.shape[2], acts.shape[3]
    lh = jnp.asarray(_bilinear_matrix(u, 32))
    lw = jnp.asarray(_bilinear_matrix(v, 32))
    ref = reference_saliency(acts[0], grads[0], lh, lw)

    assert saliency.shape == (32, 32) and logits.shape == (10,)
    # tolerance covers MXU bf16-pass matmul differences vs XLA reference and
    # the approx reciprocal used only for the final min/max normalization
    np.testing.assert_allclose(np.asarray(saliency), np.asarray(ref),
                               rtol=1e-2, atol=1e-2)
    print("KERNEL_OK")
</pallas_src>

<mosaic_0001>
module attributes {stable_mosaic.version = 11 : i64} {
  func.func @xgradcam_kernel(%arg0: memref<8x256xf32, #tpu.memory_space<vmem>>, %arg1: memref<8x256xf32, #tpu.memory_space<vmem>>, %arg2: memref<32x256xf32, #tpu.memory_space<vmem>>, %arg3: memref<256x32xf32, #tpu.memory_space<vmem>>, %arg4: memref<32x32xf32, #tpu.memory_space<vmem>>) attributes {dimension_semantics = [], scalar_prefetch = 0 : i64, scratch_operands = 0 : i64, tpu.core_type = #tpu.core_type<tc>} {
    %c0 = arith.constant 0 : index
    %c0_0 = arith.constant 0 : index
    %0 = vector.load %arg0[%c0, %c0_0] : memref<8x256xf32, #tpu.memory_space<vmem>>, vector<8x256xf32>
    %c0_1 = arith.constant 0 : index
    %c0_2 = arith.constant 0 : index
    %1 = vector.load %arg1[%c0_1, %c0_2] : memref<8x256xf32, #tpu.memory_space<vmem>>, vector<8x256xf32>
    %cst = arith.constant dense<0.000000e+00> : vector<8xf32>
    %2 = vector.multi_reduction <add>, %0, %cst [1] : vector<8x256xf32> to vector<8xf32>
    %3 = vector.shape_cast %2 : vector<8xf32> to vector<8x1xf32>
    %4 = arith.mulf %0, %1 : vector<8x256xf32>
    %cst_3 = arith.constant dense<0.000000e+00> : vector<8xf32>
    %5 = vector.multi_reduction <add>, %4, %cst_3 [1] : vector<8x256xf32> to vector<8xf32>
    %6 = vector.shape_cast %5 : vector<8xf32> to vector<8x1xf32>
    %cst_4 = arith.constant 0.000000e+00 : f32
    %7 = vector.broadcast %cst_4 : f32 to vector<8x1xf32>
    %8 = arith.cmpf one, %3, %7 : vector<8x1xf32>
    %cst_5 = arith.constant 1.000000e+00 : f32
    %9 = vector.broadcast %cst_5 : f32 to vector<8x1xf32>
    %10 = arith.select %8, %3, %9 : vector<8x1xi1>, vector<8x1xf32>
    %11 = arith.divf %6, %10 : vector<8x1xf32>
    %12 = arith.select %8, %11, %6 : vector<8x1xi1>, vector<8x1xf32>
    %13 = vector.broadcast %12 : vector<8x1xf32> to vector<8x256xf32>
    %14 = arith.mulf %13, %0 : vector<8x256xf32>
    %cst_6 = arith.constant dense<0.000000e+00> : vector<256xf32>
    %15 = vector.multi_reduction <add>, %14, %cst_6 [0] : vector<8x256xf32> to vector<256xf32>
    %16 = vector.shape_cast %15 : vector<256xf32> to vector<1x256xf32>
    %c0_7 = arith.constant 0 : index
    %c0_8 = arith.constant 0 : index
    %17 = vector.load %arg2[%c0_7, %c0_8] : memref<32x256xf32, #tpu.memory_space<vmem>>, vector<32x256xf32>
    %18 = vector.broadcast %16 : vector<1x256xf32> to vector<32x256xf32>
    %19 = arith.mulf %17, %18 : vector<32x256xf32>
    %c0_9 = arith.constant 0 : index
    %c0_10 = arith.constant 0 : index
    %20 = vector.load %arg3[%c0_9, %c0_10] : memref<256x32xf32, #tpu.memory_space<vmem>>, vector<256x32xf32>
    %cst_11 = arith.constant dense<0.000000e+00> : vector<32x32xf32>
    %21 = tpu.matmul %19, %20, %cst_11 {dimension_numbers = #tpu.dot_dimension_numbers<[1], [0], [0], [1], [0, 0, 1, 1], [], []>} : vector<32x256xf32>, vector<256x32xf32>, vector<32x32xf32> -> vector<32x32xf32>
    %cst_12 = arith.constant 0.000000e+00 : f32
    %22 = vector.broadcast %cst_12 : f32 to vector<32x32xf32>
    %23 = arith.maximumf %21, %22 : vector<32x32xf32>
    %cst_13 = arith.constant dense<0xFF800000> : vector<32xf32>
    %24 = vector.multi_reduction <maximumf>, %23, %cst_13 [1] : vector<32x32xf32> to vector<32xf32>
    %25 = vector.shape_cast %24 : vector<32xf32> to vector<32x1xf32>
    %cst_14 = arith.constant dense<0xFF800000> : vector<1xf32>
    %26 = vector.multi_reduction <maximumf>, %25, %cst_14 [0] : vector<32x1xf32> to vector<1xf32>
    %27 = vector.shape_cast %26 : vector<1xf32> to vector<1x1xf32>
    %cst_15 = arith.constant dense<0x7F800000> : vector<32xf32>
    %28 = vector.multi_reduction <minimumf>, %23, %cst_15 [1] : vector<32x32xf32> to vector<32xf32>
    %29 = vector.shape_cast %28 : vector<32xf32> to vector<32x1xf32>
    %cst_16 = arith.constant dense<0x7F800000> : vector<1xf32>
    %30 = vector.multi_reduction <minimumf>, %29, %cst_16 [0] : vector<32x1xf32> to vector<1xf32>
    %31 = vector.shape_cast %30 : vector<1xf32> to vector<1x1xf32>
    %32 = arith.cmpf one, %27, %31 : vector<1x1xf32>
    %33 = arith.subf %27, %31 : vector<1x1xf32>
    %cst_17 = arith.constant 1.000000e+00 : f32
    %34 = vector.broadcast %cst_17 : f32 to vector<1x1xf32>
    %35 = arith.select %32, %33, %34 : vector<1x1xi1>, vector<1x1xf32>
    %36 = vector.broadcast %31 : vector<1x1xf32> to vector<32x32xf32>
    %37 = arith.subf %23, %36 : vector<32x32xf32>
    %38 = tpu.reciprocal %35 {approx = true} : vector<1x1xf32> -> vector<1x1xf32>
    %39 = vector.broadcast %38 : vector<1x1xf32> to vector<32x32xf32>
    %40 = arith.mulf %37, %39 : vector<32x32xf32>
    %41 = vector.shape_cast %32 : vector<1x1xi1> to vector<1x1xi1>
    %42 = vector.broadcast %41 : vector<1x1xi1> to vector<32x32xi1>
    %43 = arith.select %42, %40, %23 : vector<32x32xi1>, vector<32x32xf32>
    %c0_18 = arith.constant 0 : index
    %c0_19 = arith.constant 0 : index
    %44 = vector.load %arg4[%c0_18, %c0_19] : memref<32x32xf32, #tpu.memory_space<vmem>>, vector<32x32xf32>
    tpu.vector_store %arg4[%c0_18, %c0_19], %43 {strides = array<i32>} : memref<32x32xf32, #tpu.memory_space<vmem>>, vector<32x32xf32>,
    return
  }
}

</mosaic_0001>

<bundles_post_ra>
// kernel: squeeze.5
= control target key start
LH: loop header
LB: loop body
LE: loop exit
PB: predicated region body
PF: predicated region fallthrough
CT: control target
= control target key end

     0   :  { %vm35_vm0 = vcmask 1043458   ;;  %vm40_vm1 = vcmask 1045508   ;;  %vm45_vm2 = vcmask 1047558   ;;  %s75_s6 = smov 3  ;;  %s78_s7 = smov 12  ;;  %vm4_vm3 = vcmask 1047556   ;;  %s738_s0 = inlined_call_operand.vmem [shape: f32[1,8,16,16], index: 0, kind: input, shape index: {}]   ;;  %s739_s1 = inlined_call_operand.vmem [shape: f32[8,256], index: 1, kind: output, shape index: {}]  }
   0x1   :  { %v362_v0 = vld [vmem:[%s738_s0 + $0x6] ss:$16 sm:%s75_s6]   ;;  %s83_s12 = smov 48  ;;  %s88_s13 = smov 192  ;;  %vm6_vm4 = vcmask 130048   ;;  %vm49_vm5 = vcmask 1048448  }
   0x2   :  { %v363_v1 = vld [vmem:[%s738_s0 + $0x6] ss:$16 sm:%s78_s7]   ;;  %s30_s18 = smov 3  ;;  %s33_s21 = smov 12  ;;  %vm94_vm6 = vcmask 917248   ;;  %vm139_vm7 = vcmask 786048  }
   0x3   :  { %v81_v2 = vsel %vm35_vm0, %v363_v1, %v362_v0  ;;  %v364_v3 = vld [vmem:[%s738_s0 + $0x6] ss:$16 sm:%s83_s12]   ;;  %v353_v6 = vld [vmem:[%s738_s0 + $0x7] ss:$16 sm:%s30_s18]   ;;  %s38_s22 = smov 48  ;;  %s43_s27 = smov 192 }
   0x4   :  { %v365_v4 = vld [vmem:[%s738_s0 + $0x6] ss:$16 sm:%s88_s13]   ;;  %v86_v5 = vsel %vm40_vm1, %v364_v3, %v81_v2  ;;  %v354_v8 = vld [vmem:[%s738_s0 + $0x7] ss:$16 sm:%s33_s21]   ;;  %s423_s28 = smov 96   ;;  %s97_s2 = smov 3 }
   0x5   :  { %v91_v7 = vsel %vm45_vm2, %v365_v4, %v86_v5  ;;  %v355_v9 = vld [vmem:[%s738_s0 + $0x7] ss:$16 sm:%s38_s22]   ;;  %v36_v10 = vsel %vm35_vm0, %v354_v8, %v353_v6  ;;  %s100_s3 = smov 12  ;;  %v366_v13 = vld [vmem:[%s738_s0 + $0xe] ss:$16 sm:%s97_s2]   ;;  %s105_s8 = smov 48 }
   0x6   :  { %92 = vrot.lane.b32.xlu1 %v91_v7, %s423_s28  ;;  %v356_v11 = vld [vmem:[%s738_s0 + $0x7] ss:$16 sm:%s43_s27]   ;;  %v41_v12 = vsel %vm40_vm1, %v355_v9, %v36_v10  ;;  %s110_s9 = smov 192  ;;  %s52_s14 = smov 3  ;;  %vm184_vm8 = vcmask 654848   ;;  %vm229_vm9 = vcmask 523648  }
   0x7   :  { %v367_v14 = vld [vmem:[%s738_s0 + $0xe] ss:$16 sm:%s100_s3]   ;;  %v46_v15 = vsel %vm45_vm2, %v356_v11, %v41_v12  ;;  %s55_s15 = smov 12  ;;  %s424_s16 = smov 112   ;;  %v357_v20 = vld [vmem:[%s738_s0 + $0xf] ss:$16 sm:%s52_s14]  }
   0x8   :  { %v103_v16 = vsel %vm35_vm0, %v367_v14, %v366_v13  ;;  %v368_v17 = vld [vmem:[%s738_s0 + $0xe] ss:$16 sm:%s105_s8]   ;;  %47 = vrot.lane.b32.xlu0 %v46_v15, %s424_s16  ;;  %s60_s19 = smov 48  ;;  %s65_s20 = smov 192  ;;  %vm274_vm10 = vcmask 392448   ;;  %vm319_vm11 = vcmask 261248  }
   0x9   :  { %v369_v18 = vld [vmem:[%s738_s0 + $0xe] ss:$16 sm:%s110_s9]   ;;  %v108_v19 = vsel %vm40_vm1, %v368_v17, %v103_v16  ;;  %v358_v22 = vld [vmem:[%s738_s0 + $0xf] ss:$16 sm:%s55_s15]   ;;  %s142_s25 = smov 3  ;;  %s150_s29 = smov 48 }
   0xa   :  { %v113_v21 = vsel %vm45_vm2, %v369_v18, %v108_v19  ;;  %v359_v23 = vld [vmem:[%s738_s0 + $0xf] ss:$16 sm:%s60_s19]   ;;  %v58_v24 = vsel %vm35_vm0, %v358_v22, %v357_v20  ;;  %v375_v27 = vld [vmem:[%s738_s0 + $0xd] ss:$16 sm:%s142_s25]   ;;  %s155_s5 = smov 192  ;;  %s120_s6 = smov 3 }
   0xb   :  { %114 = vrot.lane.b32.xlu1 %v113_v21, %s423_s28  ;;  %v360_v25 = vld [vmem:[%s738_s0 + $0xf] ss:$16 sm:%s65_s20]   ;;  %s145_s28 = smov 12  ;;  %v63_v26 = vsel %vm40_vm1, %v359_v23, %v58_v24  ;;  %s123_s11 = smov 12 }
   0xc   :  { %v376_v28 = vld [vmem:[%s738_s0 + $0xd] ss:$16 sm:%s145_s28]   ;;  %v68_v29 = vsel %vm45_vm2, %v360_v25, %v63_v26  ;;  %s128_s12 = smov 48  ;;  %v371_v34 = vld [vmem:[%s738_s0 + $0x5] ss:$16 sm:%s120_s6]   ;;  %s133_s15 = smov 192 }
   0xd   :  { %v148_v30 = vsel %vm35_vm0, %v376_v28, %v375_v27  ;;  %v377_v31 = vld [vmem:[%s738_s0 + $0xd] ss:$16 sm:%s150_s29]   ;;  %69 = vrot.lane.b32.xlu0 %v68_v29, %s424_s16  ;;  %s187_s20 = smov 3  ;;  %s190_s21 = smov 12 }
   0xe   :  { %v378_v32 = vld [vmem:[%s738_s0 + $0xd] ss:$16 sm:%s155_s5]   ;;  %v153_v33 = vsel %vm40_vm1, %v377_v31, %v148_v30  ;;  %v372_v36 = vld [vmem:[%s738_s0 + $0x5] ss:$16 sm:%s123_s11]   ;;  %s425_s22 = smov 80   ;;  %s195_s25 = smov 48 }
   0xf   :  { %v158_v35 = vsel %vm45_vm2, %v378_v32, %v153_v33  ;;  %v373_v37 = vld [vmem:[%s738_s0 + $0x5] ss:$16 sm:%s128_s12]   ;;  %v126_v38 = vsel %vm35_vm0, %v372_v36, %v371_v34  ;;  %s200_s26 = smov 192  ;;  %v384_v41 = vld [vmem:[%s738_s0 + $0xc] ss:$16 sm:%s187_s20]   ;;  %s165_s2 = smov 3 }
  0x10   :  { %159 = vrot.lane.b32.xlu1 %v158_v35, %s425_s22  ;;  %v374_v39 = vld [vmem:[%s738_s0 + $0x5] ss:$16 sm:%s133_s15]   ;;  %v131_v40 = vsel %vm40_vm1, %v373_v37, %v126_v38  ;;  %s168_s3 = smov 12  ;;  %s173_s8 = smov 48 }
  0x11   :  { %v385_v42 = vld [vmem:[%s738_s0 + $0xc] ss:$16 sm:%s190_s21]   ;;  %v136_v43 = vsel %vm45_vm2, %v374_v39, %v131_v40  ;;  %s178_s9 = smov 192  ;;  %v380_v48 = vld [vmem:[%s738_s0 + $0x4] ss:$16 sm:%s165_s2]   ;;  %s232_s12 = smov 3 }
  0x12   :  { %v193_v44 = vsel %vm35_vm0, %v385_v42, %v384_v41  ;;  %v386_v45 = vld [vmem:[%s738_s0 + $0xc] ss:$16 sm:%s195_s25]   ;;  %137 = vrot.lane.b32.xlu0 %v136_v43, %s425_s22  ;;  %s235_s17 = smov 12  ;;  %s240_s18 = smov 48 }
  0x13   :  { %v387_v46 = vld [vmem:[%s738_s0 + $0xc] ss:$16 sm:%s200_s26]   ;;  %v198_v47 = vsel %vm40_vm1, %v386_v45, %v193_v44  ;;  %v381_v50 = vld [vmem:[%s738_s0 + $0x4] ss:$16 sm:%s168_s3]   ;;  %s426_s19 = smov 64   ;;  %s245_s22 = smov 192 }
  0x14   :  { %v203_v49 = vsel %vm45_vm2, %v387_v46, %v198_v47  ;;  %v382_v51 = vld [vmem:[%s738_s0 + $0x4] ss:$16 sm:%s173_s8]   ;;  %v171_v52 = vsel %vm35_vm0, %v381_v50, %v380_v48  ;;  %s210_s23 = smov 3  ;;  %v393_v55 = vld [vmem:[%s738_s0 + $0xb] ss:$16 sm:%s232_s12]   ;;  %s213_s28 = smov 12 }
  0x15   :  { %204 = vrot.lane.b32.xlu1 %v203_v49, %s426_s19  ;;  %v383_v53 = vld [vmem:[%s738_s0 + $0x4] ss:$16 sm:%s178_s9]   ;;  %v176_v54 = vsel %vm40_vm1, %v382_v51, %v171_v52  ;;  %s218_s29 = smov 48  ;;  %s223_s5 = smov 192 }
  0x16   :  { %v394_v56 = vld [vmem:[%s738_s0 + $0xb] ss:$16 sm:%s235_s17]   ;;  %v181_v57 = vsel %vm45_vm2, %v383_v53, %v176_v54  ;;  %v389_v62 = vld [vmem:[%s738_s0 + $0x3] ss:$16 sm:%s210_s23]   ;;  %s277_s8 = smov 3  ;;  %s280_s9 = smov 12 }
  0x17   :  { %v238_v58 = vsel %vm35_vm0, %v394_v56, %v393_v55  ;;  %v395_v59 = vld [vmem:[%s738_s0 + $0xb] ss:$16 sm:%s240_s18]   ;;  %182 = vrot.lane.b32.xlu0 %v181_v57, %s426_s19  ;;  %s285_s14 = smov 48  ;;  %s290_s15 = smov 192 }
  0x18   :  { %v396_v60 = vld [vmem:[%s738_s0 + $0xb] ss:$16 sm:%s245_s22]   ;;  %v243_v61 = vsel %vm40_vm1, %v395_v59, %v238_v58  ;;  %v390_v0 = vld [vmem:[%s738_s0 + $0x3] ss:$16 sm:%s213_s28]   ;;  %s427_s16 = smov 48   ;;  %s255_s19 = smov 3 }
  0x19   :  { %v248_v63 = vsel %vm45_vm2, %v396_v60, %v243_v61  ;;  %v391_v1 = vld [vmem:[%s738_s0 + $0x3] ss:$16 sm:%s218_s29]   ;;  %v216_v2 = vsel %vm35_vm0, %v390_v0, %v389_v62  ;;  %v402_v5 = vld [vmem:[%s738_s0 + $0xa] ss:$16 sm:%s277_s8]   ;;  %s258_s24 = smov 12  ;;  %s263_s25 = smov 48 }
  0x1a   :  { %249 = vrot.lane.b32.xlu1 %v248_v63, %s427_s16  ;;  %v392_v3 = vld [vmem:[%s738_s0 + $0x3] ss:$16 sm:%s223_s5]   ;;  %v221_v4 = vsel %vm40_vm1, %v391_v1, %v216_v2  ;;  %s268_s30 = smov 192  ;;  %s322_s4 = smov 3 }
  0x1b   :  { %v403_v6 = vld [vmem:[%s738_s0 + $0xa] ss:$16 sm:%s280_s9]   ;;  %v226_v7 = vsel %vm45_vm2, %v392_v3, %v221_v4  ;;  %v398_v12 = vld [vmem:[%s738_s0 + $0x2] ss:$16 sm:%s255_s19]   ;;  %s325_s5 = smov 12  ;;  %s330_s10 = smov 48 }
  0x1c   :  { %v283_v8 = vsel %vm35_vm0, %v403_v6, %v402_v5  ;;  %v404_v9 = vld [vmem:[%s738_s0 + $0xa] ss:$16 sm:%s285_s14]   ;;  %227 = vrot.lane.b32.xlu0 %v226_v7, %s427_s16  ;;  %s335_s11 = smov 192  ;;  %s428_s12 = smov 32  }
  0x1d   :  { %v405_v10 = vld [vmem:[%s738_s0 + $0xa] ss:$16 sm:%s290_s15]   ;;  %v288_v11 = vsel %vm40_vm1, %v404_v9, %v283_v8  ;;  %v399_v14 = vld [vmem:[%s738_s0 + $0x2] ss:$16 sm:%s258_s24]   ;;  %s300_s15 = smov 3  ;;  %s303_s20 = smov 12 }
  0x1e   :  { %v293_v13 = vsel %vm45_vm2, %v405_v10, %v288_v11  ;;  %v400_v15 = vld [vmem:[%s738_s0 + $0x2] ss:$16 sm:%s263_s25]   ;;  %v261_v16 = vsel %vm35_vm0, %v399_v14, %v398_v12  ;;  %v411_v19 = vld [vmem:[%s738_s0 + $0x9] ss:$16 sm:%s322_s4]   ;;  %s308_s21 = smov 48  ;;  %s313_s26 = smov 192 }
  0x1f   :  { %294 = vrot.lane.b32.xlu1 %v293_v13, %s428_s12  ;;  %v401_v17 = vld [vmem:[%s738_s0 + $0x2] ss:$16 sm:%s268_s30]   ;;  %v266_v18 = vsel %vm40_vm1, %v400_v15, %v261_v16  ;;  %v2_v27 = vld [vmem:[%s738_s0] ss:$8 sm:$0xf]   ;;  %s429_s6 = smov 16  }
  0x20   :  { %v412_v20 = vld [vmem:[%s738_s0 + $0x9] ss:$16 sm:%s325_s5]   ;;  %v271_v21 = vsel %vm45_vm2, %v401_v17, %v266_v18  ;;  %v407_v26 = vld [vmem:[%s738_s0 + $0x1] ss:$16 sm:%s300_s15]  }
  0x21   :  { %v328_v22 = vsel %vm35_vm0, %v412_v20, %v411_v19  ;;  %v413_v23 = vld [vmem:[%s738_s0 + $0x9] ss:$16 sm:%s330_s10]   ;;  %272 = vrot.lane.b32.xlu0 %v271_v21, %s428_s12  ;;  %v3_v33 = vld [vmem:[%s738_s0] ss:$8 sm:$0xf0]  }
  0x22   :  { %v414_v24 = vld [vmem:[%s738_s0 + $0x9] ss:$16 sm:%s335_s11]   ;;  %v333_v25 = vsel %vm40_vm1, %v413_v23, %v328_v22  ;;  %v408_v29 = vld [vmem:[%s738_s0 + $0x1] ss:$16 sm:%s303_s20]   ;;  %v5_v35 = vsel %vm4_vm3, %v3_v33, %v2_v27 }
  0x23   :  { %v338_v28 = vsel %vm45_vm2, %v414_v24, %v333_v25  ;;  %v409_v30 = vld [vmem:[%s738_s0 + $0x1] ss:$16 sm:%s308_s21]   ;;  %v306_v31 = vsel %vm35_vm0, %v408_v29, %v407_v26  ;;  %v347_v36 = vld [vmem:[%s738_s0 + $0x40] ss:$8 sm:$0xf]  }
  0x24   :  { %339 = vrot.lane.b32.xlu1 %v338_v28, %s429_s6  ;;  %v410_v32 = vld [vmem:[%s738_s0 + $0x1] ss:$16 sm:%s313_s26]   ;;  %v311_v34 = vsel %vm40_vm1, %v409_v30, %v306_v31  ;;  %v348_v37 = vld [vmem:[%s738_s0 + $0x40] ss:$8 sm:$0xf0]  }
  0x25   :  { %v316_v38 = vsel %vm45_vm2, %v410_v32, %v311_v34  ;;  %7 = vst.msk [vmem:[%s739_s1] ss:$8 sm:$0x3] %vm6_vm4, %v5_v35   ;;  %344 = vst.msk [vmem:[%s739_s1 - $0xf] ss:$8 sm:$0xc] %vm6_vm4, %v5_v35   ;;  %v19_v39 = vsel %vm4_vm3, %v348_v37, %v347_v36 }
  0x26   :  { %345 = vst.msk [vmem:[%s739_s1 - $0x1e] ss:$8 sm:$0x30] %vm6_vm4, %v5_v35   ;;  %346 = vst.msk [vmem:[%s739_s1 - $0x2d] ss:$8 sm:$0xc0] %vm6_vm4, %v5_v35   ;;  %317 = vrot.lane.b32.xlu0 %v316_v38, %s429_s6 }
  0x27   :  { %349 = vst.msk [vmem:[%s739_s1 + $0x4] ss:$8 sm:$0x3] %vm6_vm4, %v19_v39   ;;  %350 = vst.msk [vmem:[%s739_s1 - $0xb] ss:$8 sm:$0xc] %vm6_vm4, %v19_v39  }
  0x28   :  { %351 = vst.msk [vmem:[%s739_s1 - $0x1a] ss:$8 sm:$0x30] %vm6_vm4, %v19_v39   ;;  %352 = vst.msk [vmem:[%s739_s1 - $0x29] ss:$8 sm:$0xc0] %vm6_vm4, %v19_v39  }
  0x78   :  { %v93_v40 = vpop.permute.xlu1 %92  }
  0x7a   :  { %v48_v41 = vpop.permute.xlu0 %47  }
  0x7b   :  { %50 = vst.msk [vmem:[%s739_s1] sm:$0xff] %vm49_vm5, %v48_v41  }
  0x7c   :  { %95 = vst.msk [vmem:[%s739_s1] sm:$0xff] %vm94_vm6, %v93_v40  }
  0x7d   :  { %v115_v42 = vpop.permute.xlu1 %114  }
  0x7f   :  { %v70_v43 = vpop.permute.xlu0 %69  }
  0x80   :  { %361 = vst.msk [vmem:[%s739_s1 + $0x8] sm:$0xff] %vm49_vm5, %v70_v43  }
  0x81   :  { %370 = vst.msk [vmem:[%s739_s1 + $0x8] sm:$0xff] %vm94_vm6, %v115_v42  }
  0x82   :  { %v160_v44 = vpop.permute.xlu1 %159  }
  0x83   :  { %379 = vst.msk [vmem:[%s739_s1 + $0x8] sm:$0xff] %vm139_vm7, %v160_v44  }
  0x84   :  { %v138_v45 = vpop.permute.xlu0 %137  }
  0x85   :  { %140 = vst.msk [vmem:[%s739_s1] sm:$0xff] %vm139_vm7, %v138_v45  }
  0x87   :  { %v205_v46 = vpop.permute.xlu1 %204  }
  0x88   :  { %388 = vst.msk [vmem:[%s739_s1 + $0x8] sm:$0xff] %vm184_vm8, %v205_v46  }
  0x89   :  { %v183_v47 = vpop.permute.xlu0 %182  }
  0x8a   :  { %185 = vst.msk [vmem:[%s739_s1] sm:$0xff] %vm184_vm8, %v183_v47  }
  0x8c   :  { %v250_v48 = vpop.permute.xlu1 %249  }
  0x8d   :  { %397 = vst.msk [vmem:[%s739_s1 + $0x8] sm:$0xff] %vm229_vm9, %v250_v48  }
  0x8e   :  { %v228_v49 = vpop.permute.xlu0 %227  }
  0x8f   :  { %230 = vst.msk [vmem:[%s739_s1] sm:$0xff] %vm229_vm9, %v228_v49  }
  0x91   :  { %v295_v50 = vpop.permute.xlu1 %294  }
  0x92   :  { %406 = vst.msk [vmem:[%s739_s1 + $0x8] sm:$0xff] %vm274_vm10, %v295_v50  }
  0x93   :  { %v273_v51 = vpop.permute.xlu0 %272  }
  0x94   :  { %275 = vst.msk [vmem:[%s739_s1] sm:$0xff] %vm274_vm10, %v273_v51  }
  0x96   :  { %v340_v52 = vpop.permute.xlu1 %339  }
  0x97   :  { %415 = vst.msk [vmem:[%s739_s1 + $0x8] sm:$0xff] %vm319_vm11, %v340_v52  }
  0x98   :  { %v318_v53 = vpop.permute.xlu0 %317  }
  0x99   :  { %320 = vst.msk [vmem:[%s739_s1] sm:$0xff] %vm319_vm11, %v318_v53  }

// kernel: xgradcam_forward.1
= control target key start
LH: loop header
LB: loop body
LE: loop exit
PB: predicated region body
PF: predicated region fallthrough
CT: control target
= control target key end

     0   :  { %s589_s0 = inlined_call_operand.vmem [shape: f32[8,256], index: 0, kind: input, shape index: {}]   ;;  %s590_s1 = inlined_call_operand.vmem [shape: f32[8,256], index: 1, kind: input, shape index: {}]   ;;  %s591_s2 = inlined_call_operand.vmem [shape: f32[32,256], index: 2, kind: input, shape index: {}]   ;;  %s592_s3 = inlined_call_operand.vmem [shape: f32[256,32], index: 3, kind: input, shape index: {}]   ;;  %s593_s4 = inlined_call_operand.hbm [shape: f32[32,32], index: 4, kind: output, shape index: {}]  }
   0x1   :  { %v403_v0 = vld [vmem:[%s589_s0] sm:$0xff]  ;;  %v408_v1 = vld [vmem:[%s589_s0 + $0x8] sm:$0xff] }
   0x2   :  { %v20_v2 = vld [vmem:[%s590_s1] sm:$0xff]  ;;  %v22_v3 = vadd.f32 %v408_v1, %v403_v0  ;;  %v21_v4 = vld [vmem:[%s590_s1 + $0x8] sm:$0xff] }
   0x3   :  { %v25_v5 = vmul.f32 %v20_v2, %v403_v0 }
   0x4   :  { %9 = vsyncpa [#allocation3], 0  ;;  %v26_v6 = vmul.f32 %v21_v4, %v408_v1  ;;  %23 = vadd.xlane.f32.xlu0 %v22_v3  ;;  %v96_v8 = vld [vmem:[%s592_s3 + $0xf8] sm:$0xff]  ;;  %v95_v10 = vld [vmem:[%s592_s3 + $0xf0] sm:$0xff]  ;;  %vm186_vm1 = vcmask 261120  }
   0x5   :  { %v80_v9 = vld [vmem:[%s592_s3 + $0x78] sm:$0xff]  ;;  %267 = vmatprep.subr.mxu0 %v96_v8  ;;  %311 = vmatprep.subr.mxu1 %v96_v8  ;;  %v79_v11 = vld [vmem:[%s592_s3 + $0x70] sm:$0xff]  ;;  %v94_v12 = vld [vmem:[%s592_s3 + $0xe8] sm:$0xff] }
   0x6   :  { %v27_v7 = vadd.f32 %v26_v6, %v25_v5  ;;  %268 = vmatpush3.msra.mxu0 %v80_v9  ;;  %327 = vmatpush3.msra.mxu1 %v80_v9  ;;  %v78_v13 = vld [vmem:[%s592_s3 + $0x68] sm:$0xff]  ;;  %v93_v14 = vld [vmem:[%s592_s3 + $0xe0] sm:$0xff]  ;;  %v92_v16 = vld [vmem:[%s592_s3 + $0xd8] sm:$0xff] }
   0x7   :  { %269 = vmatprep.subr.mxu0 %v95_v10  ;;  %312 = vmatprep.subr.mxu1 %v95_v10  ;;  %v77_v15 = vld [vmem:[%s592_s3 + $0x60] sm:$0xff]  ;;  %v76_v17 = vld [vmem:[%s592_s3 + $0x58] sm:$0xff]  ;;  %v91_v18 = vld [vmem:[%s592_s3 + $0xd0] sm:$0xff] }
   0x8   :  { %28 = vadd.xlane.f32.xlu0 %v27_v7  ;;  %270 = vmatpush3.msra.mxu0 %v79_v11  ;;  %v75_v19 = vld [vmem:[%s592_s3 + $0x50] sm:$0xff]  ;;  %v90_v20 = vld [vmem:[%s592_s3 + $0xc8] sm:$0xff]  ;;  %v89_v22 = vld [vmem:[%s592_s3 + $0xc0] sm:$0xff] }
   0x9   :  { %328 = vmatpush3.msra.mxu1 %v79_v11  ;;  %271 = vmatprep.subr.mxu0 %v94_v12  ;;  %v74_v21 = vld [vmem:[%s592_s3 + $0x48] sm:$0xff]  ;;  %v73_v23 = vld [vmem:[%s592_s3 + $0x40] sm:$0xff]  ;;  %v88_v24 = vld [vmem:[%s592_s3 + $0xb8] sm:$0xff] }
   0xa   :  { %313 = vmatprep.subr.mxu1 %v94_v12  ;;  %272 = vmatpush3.msra.mxu0 %v78_v13  ;;  %v72_v25 = vld [vmem:[%s592_s3 + $0x38] sm:$0xff]  ;;  %v87_v26 = vld [vmem:[%s592_s3 + $0xb0] sm:$0xff]  ;;  %v86_v28 = vld [vmem:[%s592_s3 + $0xa8] sm:$0xff] }
   0xb   :  { %329 = vmatpush3.msra.mxu1 %v78_v13  ;;  %273 = vmatprep.subr.mxu0 %v93_v14  ;;  %v71_v27 = vld [vmem:[%s592_s3 + $0x30] sm:$0xff]  ;;  %v70_v29 = vld [vmem:[%s592_s3 + $0x28] sm:$0xff]  ;;  %v85_v30 = vld [vmem:[%s592_s3 + $0xa0] sm:$0xff] }
   0xc   :  { %314 = vmatprep.subr.mxu1 %v93_v14  ;;  %274 = vmatpush3.msra.mxu0 %v77_v15  ;;  %v69_v31 = vld [vmem:[%s592_s3 + $0x20] sm:$0xff]  ;;  %v84_v32 = vld [vmem:[%s592_s3 + $0x98] sm:$0xff]  ;;  %v83_v34 = vld [vmem:[%s592_s3 + $0x90] sm:$0xff] }
   0xd   :  { %330 = vmatpush3.msra.mxu1 %v77_v15  ;;  %275 = vmatprep.subr.mxu0 %v92_v16  ;;  %v68_v33 = vld [vmem:[%s592_s3 + $0x18] sm:$0xff]  ;;  %v67_v35 = vld [vmem:[%s592_s3 + $0x10] sm:$0xff]  ;;  %v82_v36 = vld [vmem:[%s592_s3 + $0x88] sm:$0xff] }
   0xe   :  { %315 = vmatprep.subr.mxu1 %v92_v16  ;;  %276 = vmatpush3.msra.mxu0 %v76_v17  ;;  %v66_v37 = vld [vmem:[%s592_s3 + $0x8] sm:$0xff]  ;;  %v81_v38 = vld [vmem:[%s592_s3 + $0x80] sm:$0xff]  ;;  %v51_v8 = vld [vmem:[%s591_s2 + $0x10] sm:$0xff] }
   0xf   :  { %331 = vmatpush3.msra.mxu1 %v76_v17  ;;  %277 = vmatprep.subr.mxu0 %v91_v18  ;;  %v65_v39 = vld [vmem:[%s592_s3] sm:$0xff]  ;;  %v50_v58 = vld [vmem:[%s591_s2 + $0x8] sm:$0xff]  ;;  %v55_v9 = vld [vmem:[%s591_s2 + $0x30] sm:$0xff] }
  0x10   :  { %316 = vmatprep.subr.mxu1 %v91_v18  ;;  %278 = vmatpush3.msra.mxu0 %v75_v19  ;;  %v54_v59 = vld [vmem:[%s591_s2 + $0x28] sm:$0xff]  ;;  %v49_v60 = vld [vmem:[%s591_s2] sm:$0xff] }
  0x11   :  { %332 = vmatpush3.msra.mxu1 %v75_v19  ;;  %279 = vmatprep.subr.mxu0 %v90_v20  ;;  %v53_v61 = vld [vmem:[%s591_s2 + $0x20] sm:$0xff] }
  0x12   :  { %317 = vmatprep.subr.mxu1 %v90_v20  ;;  %280 = vmatpush3.msra.mxu0 %v74_v21 }
  0x13   :  { %333 = vmatpush3.msra.mxu1 %v74_v21  ;;  %281 = vmatprep.subr.mxu0 %v89_v22 }
  0x14   :  { %318 = vmatprep.subr.mxu1 %v89_v22  ;;  %282 = vmatpush3.msra.mxu0 %v73_v23 }
  0x15   :  { %334 = vmatpush3.msra.mxu1 %v73_v23  ;;  %283 = vmatprep.subr.mxu0 %v88_v24 }
  0x16   :  { %319 = vmatprep.subr.mxu1 %v88_v24  ;;  %284 = vmatpush3.msra.mxu0 %v72_v25 }
  0x17   :  { %335 = vmatpush3.msra.mxu1 %v72_v25  ;;  %285 = vmatprep.subr.mxu0 %v87_v26 }
  0x18   :  { %320 = vmatprep.subr.mxu1 %v87_v26  ;;  %286 = vmatpush3.msra.mxu0 %v71_v27 }
  0x19   :  { %336 = vmatpush3.msra.mxu1 %v71_v27  ;;  %287 = vmatprep.subr.mxu0 %v86_v28 }
  0x1a   :  { %321 = vmatprep.subr.mxu1 %v86_v28  ;;  %288 = vmatpush3.msra.mxu0 %v70_v29 }
  0x1b   :  { %337 = vmatpush3.msra.mxu1 %v70_v29  ;;  %289 = vmatprep.subr.mxu0 %v85_v30 }
  0x1c   :  { %322 = vmatprep.subr.mxu1 %v85_v30  ;;  %290 = vmatpush3.msra.mxu0 %v69_v31 }
  0x1d   :  { %338 = vmatpush3.msra.mxu1 %v69_v31  ;;  %291 = vmatprep.subr.mxu0 %v84_v32 }
  0x1e   :  { %323 = vmatprep.subr.mxu1 %v84_v32  ;;  %292 = vmatpush3.msra.mxu0 %v68_v33 }
  0x1f   :  { %339 = vmatpush3.msra.mxu1 %v68_v33  ;;  %293 = vmatprep.subr.mxu0 %v83_v34 }
  0x20   :  { %324 = vmatprep.subr.mxu1 %v83_v34  ;;  %294 = vmatpush3.msra.mxu0 %v67_v35 }
  0x21   :  { %340 = vmatpush3.msra.mxu1 %v67_v35  ;;  %295 = vmatprep.subr.mxu0 %v82_v36 }
  0x22   :  { %325 = vmatprep.subr.mxu1 %v82_v36  ;;  %296 = vmatpush3.msra.mxu0 %v66_v37 }
  0x23   :  { %341 = vmatpush3.msra.mxu1 %v66_v37  ;;  %297 = vmatprep.subr.mxu0 %v81_v38 }
  0x24   :  { %326 = vmatprep.subr.mxu1 %v81_v38  ;;  %298 = vmatpush3.msra.mxu0 %v65_v39 }
  0x25   :  { %342 = vmatpush3.msra.mxu1 %v65_v39 }
  0x8d   :  { %v24_v40 = vpop.xlane.xlu0 %23 }
  0x8e   :  { %vm30_vm0 = vcmp.ne.f32.partialorder %v24_v40, 0.0 }
  0x8f   :  { %v31_v41 = vsel %vm30_vm0, %v24_v40, 1.0 }
  0x90   :  { %346 = vrcp.f32 %v31_v41 }
  0x91   :  { %v29_v42 = vpop.xlane.xlu0 %28 }
  0x9d   :  { %v347_v43 = vpop.eup %346 }
  0x9e   :  { %v33_v44 = vmul.f32 %v347_v43, %v29_v42 }
  0xa0   :  { %v34_v45 = vsel %vm30_vm0, %v33_v44, %v29_v42 }
  0xa1   :  { %v35_v46 = vmul.f32 %v34_v45, %v403_v0  ;;  %v36_v47 = vmul.f32 %v34_v45, %v408_v1  ;;  %v52_v0 = vld [vmem:[%s591_s2 + $0x18] sm:$0xff] }
  0xa2   :  { %v56_v1 = vld [vmem:[%s591_s2 + $0x38] sm:$0xff]  ;;  %s372_s2 = smov [#allocation2]  }
  0xa3   :  { %v37_v48 = vrot.slane %v35_v46, 4  ;;  %v43_v49 = vrot.slane %v36_v47, 4  ;;  %s256_s18 = sshll.u32 %s372_s2, 4  ;;  %s257_s18 = int_to_ptr.vmem [resolvable:$true] %s256_s18 }
  0xa4   :  { %s350_s19 = scalar_lea.vmem %s257_s18, 512  ;;  %p355_p1 = scmp.lt.s32.totalorder %s257_s18, %s257_s18 }
  0xa5   :  { %v38_v50 = vadd.f32 %v37_v48, %v35_v46  ;;  %v44_v51 = vadd.f32 %v43_v49, %v36_v47  ;;  %p351_p0 = scmp.ne.s32.totalorder %s257_s18, %s350_s19  ;;  %p356_p2 = scmp.lt.s32.totalorder %s350_s19, %s350_s19 }
  0xa7   :  { %v39_v52 = vrot.slane %v38_v50, 2  ;;  %v45_v53 = vrot.slane %v44_v51, 2  ;;  %p357_p3 = por %p356_p2, %p355_p1 }
  0xa9   :  { %v40_v54 = vadd.f32 %v39_v52, %v38_v50  ;;  %v46_v55 = vadd.f32 %v45_v53, %v44_v51  ;;  %p358_p4 = pnand %p357_p3, %p351_p0 }
  0xab   :  { %v41_v56 = vrot.slane %v40_v54, 1  ;;  %v47_v57 = vrot.slane %v46_v55, 1 }
  0xad   :  { %v42_v62 = vadd.f32 %v41_v56, %v40_v54  ;;  %v48_v63 = vadd.f32 %v47_v57, %v46_v55 }
  0xaf   :  { %v58_v2 = vmul.f32 %v50_v58, %v48_v63  ;;  %v62_v3 = vmul.f32 %v54_v59, %v48_v63  ;;  %v57_v4 = vmul.f32 %v49_v60, %v42_v62  ;;  %v61_v5 = vmul.f32 %v53_v61, %v42_v62 }
  0xb0   :  { %v60_v6 = vmul.f32 %v52_v0, %v48_v63  ;;  %v64_v7 = vmul.f32 %v56_v1, %v48_v63  ;;  %v59_v10 = vmul.f32 %v51_v8, %v42_v62  ;;  %v63_v11 = vmul.f32 %v55_v9, %v42_v62 }
  0xb1   :  { %161 = vmatprep.mubr.f32.mxu0 %v58_v2  ;;  %171 = vmatprep.mubr.f32.mxu1 %v62_v3 }
  0xb2   :  { %162 = vmatmul.mubr.f32.vlgmr.msra.gmra.mxu0 %v57_v4  ;;  %172 = vmatmul.mubr.f32.vlgmr.msra.gmra.mxu1 %v61_v5 }
  0xb3   :  { %166 = vmatprep.mubr.f32.mxu0 %v60_v6  ;;  %176 = vmatprep.mubr.f32.mxu1 %v64_v7 }
  0xb6   :  { %167 = vmatmul.mubr.f32.gmra.mxu0 %v59_v10  ;;  %177 = vmatmul.mubr.f32.gmra.mxu1 %v63_v11 }
 0x172   :  { %v299_v12 = vpop.f32.mrf.mxu0  ;;  %v305_v13 = vpop.f32.mrf.mxu1 }
 0x174   :  { %v300_v14 = vpop.f32.mrf.mxu0  ;;  %v306_v15 = vpop.f32.mrf.mxu1 }
 0x175   :  { %v301_v16 = vadd.f32 %v300_v14, %v299_v12  ;;  %v307_v17 = vadd.f32 %v306_v15, %v305_v13 }
 0x176   :  { %v302_v18 = vpop.f32.mrf.mxu0  ;;  %v308_v19 = vpop.f32.mrf.mxu1 }
 0x177   :  { %v542_v20 = vmax.f32 %v301_v16, 0.0  ;;  %v544_v21 = vmax.f32 %v307_v17, 0.0 }
 0x178   :  { %v303_v22 = vpop.f32.mrf.mxu0  ;;  %v309_v23 = vpop.f32.mrf.mxu1 }
 0x179   :  { %v304_v24 = vadd.f32 %v303_v22, %v302_v18  ;;  %v310_v25 = vadd.f32 %v309_v23, %v308_v19  ;;  %v193_v26 = vsel %vm186_vm1, %v544_v21, -inf  ;;  %v187_v27 = vsel %vm186_vm1, %v542_v20, -inf }
 0x17a   :  { %194 = vmax.xlane.f32.xlu0 %v193_v26  ;;  %188 = vmax.xlane.f32.xlu1 %v187_v27  ;;  %v208_v30 = vsel %vm186_vm1, %v542_v20, inf  ;;  %v214_v32 = vsel %vm186_vm1, %v544_v21, inf }
 0x17b   :  { %v183_v28 = vmax.f32 %v304_v24, 0.0  ;;  %v550_v29 = vmax.f32 %v310_v25, 0.0 }
 0x17d   :  { %v190_v31 = vsel %vm186_vm1, %v183_v28, -inf  ;;  %v196_v33 = vsel %vm186_vm1, %v550_v29, -inf  ;;  %v211_v34 = vsel %vm186_vm1, %v183_v28, inf  ;;  %v217_v35 = vsel %vm186_vm1, %v550_v29, inf }
 0x17e   :  { %209 = vmin.xlane.f32.xlu0 %v208_v30  ;;  %191 = vmax.xlane.f32.xlu1 %v190_v31 }
 0x182   :  { %215 = vmin.xlane.f32.xlu0 %v214_v32  ;;  %197 = vmax.xlane.f32.xlu1 %v196_v33 }
 0x186   :  { %212 = vmin.xlane.f32.xlu1 %v211_v34 }
 0x18a   :  { %218 = vmin.xlane.f32.xlu1 %v217_v35 }
 0x203   :  { %v189_v36 = vpop.xlane.xlu1 %188  ;;  %v195_v37 = vpop.xlane.xlu0 %194 }
 0x207   :  { %v192_v38 = vpop.xlane.xlu1 %191  ;;  %v210_v42 = vpop.xlane.xlu0 %209 }
 0x208   :  { %v199_v40 = vmax.f32 %v189_v36, %v192_v38 }
 0x20b   :  { %v198_v39 = vpop.xlane.xlu1 %197  ;;  %v216_v47 = vpop.xlane.xlu0 %215 }
 0x20c   :  { %v200_v41 = vmax.f32 %v195_v37, %v198_v39 }
 0x20e   :  { %v201_v43 = vmax.f32 %v199_v40, %v200_v41 }
 0x20f   :  { %v213_v44 = vpop.xlane.xlu1 %212 }
 0x210   :  { %v202_v45 = vrot.slane %v201_v43, 4  ;;  %v220_v49 = vmin.f32 %v210_v42, %v213_v44 }
 0x212   :  { %v203_v46 = vmax.f32 %v201_v43, %v202_v45 }
 0x213   :  { %v219_v48 = vpop.xlane.xlu1 %218 }
 0x214   :  { %v221_v50 = vmin.f32 %v216_v47, %v219_v48  ;;  %v204_v51 = vrot.slane %v203_v46, 2 }
 0x216   :  { %v222_v52 = vmin.f32 %v220_v49, %v221_v50  ;;  %v205_v54 = vmax.f32 %v203_v46, %v204_v51 }
 0x218   :  { %v223_v53 = vrot.slane %v222_v52, 4  ;;  %v206_v57 = vrot.slane %v205_v54, 1 }
 0x21a   :  { %v224_v55 = vmin.f32 %v222_v52, %v223_v53  ;;  %v207_v60 = vmax.f32 %v205_v54, %v206_v57 }
 0x21c   :  { %v225_v56 = vrot.slane %v224_v55, 2 }
 0x21e   :  { %v226_v58 = vmin.f32 %v224_v55, %v225_v56 }
 0x220   :  { %v227_v59 = vrot.slane %v226_v58, 1 }
 0x222   :  { %v228_v61 = vmin.f32 %v226_v58, %v227_v59 }
 0x224   :  { %v230_v62 = vsub.f32 %v207_v60, %v228_v61  ;;  %vm562_vm2 = vcmp.ne.f32.partialorder %v207_v60, %v228_v61  ;;  %v232_v1 = vsub.f32 %v542_v20, %v228_v61  ;;  %v233_v2 = vsub.f32 %v183_v28, %v228_v61 }
 0x225   :  { %v234_v3 = vsub.f32 %v544_v21, %v228_v61  ;;  %v235_v4 = vsub.f32 %v550_v29, %v228_v61 }
 0x226   :  { %v231_v0 = vsel %vm562_vm2, %v230_v62, 1.0 }
 0x227   :  { %348 = vrcp.f32 %v231_v0 }
 0x234   :  { %v349_v5 = vpop.eup %348 }
 0x235   :  { %v237_v6 = vmul.f32 %v349_v5, %v232_v1  ;;  %v238_v7 = vmul.f32 %v349_v5, %v233_v2  ;;  %v239_v8 = vmul.f32 %v349_v5, %v234_v3  ;;  %v240_v9 = vmul.f32 %v349_v5, %v235_v4 }
 0x237   :  { %v243_v10 = vsel %vm562_vm2, %v237_v6, %v542_v20  ;;  %v244_v11 = vsel %vm562_vm2, %v238_v7, %v183_v28  ;;  %v245_v12 = vsel %vm562_vm2, %v239_v8, %v544_v21  ;;  %v246_v13 = vsel %vm562_vm2, %v240_v9, %v550_v29 }
 0x238   :  { %247 = vst.msk [vmem:[#allocation2] sm:$0xff] %vm186_vm1, %v243_v10  ;;  %248 = vst.msk [vmem:[#allocation2 + $0x8] sm:$0xff] %vm186_vm1, %v244_v11 }
 0x239   :  { %249 = vst.msk [vmem:[#allocation2 + $0x10] sm:$0xff] %vm186_vm1, %v245_v12  ;;  %250 = vst.msk [vmem:[#allocation2 + $0x18] sm:$0xff] %vm186_vm1, %v246_v13 }
 0x23a   :  { %361 = shalt.err (!%p358_p4)
}
 0x23b   :  { %s373_s20 = smov 128   ;;  %s374_s21 = smov 8  }
 0x23c   :  { %262 = dma.vmem_to_hbm [thread:$0]  %s257_s18, 512, %s593_s4, [#allocation3], %s373_s20, %s373_s20, %s374_s21  }
 0x23d   :  { %370 = dma.done.wait [#allocation3], 512  }
 0x23e   :  { %371 = vsyncadd [#allocation3], 4294966784 }
 0x23f   :  { %266 = vsyncpa [#allocation3], 1 }

</bundles_post_ra>
